<compile_context>
chip_gen: v7x
topology: tpu7x:2x2x1
jax: 0.10.0
libtpu: 0.0.40
codegen_flags: <defaults>
</compile_context>

<pallas_src>
import functools
import math

import jax
import jax.numpy as jnp
from jax.experimental import pallas as pl
from jax.experimental.pallas import tpu as pltpu


def _sinusoidal_kernel(time_ref, freq_ref, phase_ref, out_ref, *, dim_p: int, k: int):
    """One (TB, width) output block, width = k * dim_p (multiple of 128).

    time_ref : (TB, k)     f32 -- k timesteps packed per output row
    freq_ref : (1, width)  f32 -- per-lane frequency ([freq|freq] tiled k times)
    phase_ref: (1, width)  f32 -- 0 for sin lanes, pi/2 for cos lanes
    out_ref  : (TB, width) f32
    """
    tb, width = out_ref.shape
    t = time_ref[...]            # (TB, k)
    freq = freq_ref[...]         # (1, width)
    phase = phase_ref[...]       # (1, width)

    if k == 1:
        # (TB,1) * (1,width): plain broadcast multiply, no iota / mod / select.
        theta = t * freq
    else:
        # Expand the k packed timesteps across their dim_p-wide column blocks
        # with a short chain of lane-range selects (pure VPU, no relayout).
        col = jax.lax.broadcasted_iota(jnp.int32, (tb, width), dimension=1)
        t_expand = jnp.broadcast_to(t[:, 0:1], (tb, width))
        for q in range(1, k):
            t_expand = jnp.where(col >= q * dim_p, t[:, q:q + 1], t_expand)
        theta = t_expand * freq

    # cos(x) == sin(x + pi/2): a single transcendental, one lane-dense store.
    out_ref[...] = jnp.sin(theta + phase).astype(out_ref.dtype)


def sinusoidal_position_embeddings(
    time: jax.Array, dim: int, *, block_rows: int = 1024
) -> jax.Array:
    """JAX/Pallas equivalent of SinusoidalPositionEmbeddings(dim)(time).

    Args:
        time: (B,) array of timesteps (int or float).
        dim:  embedding dimension (even).

    Returns:
        (B, dim) float32 embeddings.
    """
    assert dim % 2 == 0, "dim must be even"
    b = time.shape[0]
    half = dim // 2
    time_f = time.astype(jnp.float32).reshape(b)

    # ---- host-side constants, exactly matching the PyTorch module ----------
    exponent = jnp.arange(half, dtype=jnp.float32) / jnp.float32(half)
    freq_half = jnp.float32(1e-4) ** exponent               # (half,)
    freq_full = jnp.concatenate([freq_half, freq_half])      # (dim,) [sin|cos]

    # ---- lane-dense layout ---------------------------------------------------
    # dim >= 128 : k = 1, pad lanes up to the next multiple of 128.
    # dim  < 128 : pack k = lcm(dim,128)/dim logical rows per physical row so
    #              k*dim is a multiple of 128 (row-major layout unchanged).
    if dim >= 128:
        k = 1
        dim_p = ((dim + 127) // 128) * 128
    else:
        k = math.lcm(dim, 128) // dim
        dim_p = dim
    width = k * dim_p

    freq_p = jnp.zeros((dim_p,), jnp.float32).at[:dim].set(freq_full)
    phase_p = jnp.zeros((dim_p,), jnp.float32).at[half:dim].set(jnp.pi / 2.0)
    freq_row = jnp.tile(freq_p, k).reshape(1, width)
    phase_row = jnp.tile(phase_p, k).reshape(1, width)

    # ---- pad the batch so packing + row blocking are exact (no masked vst) ---
    rows = -(-b // k)                          # ceil(b / k)
    if rows <= block_rows:
        rows_p = ((rows + 7) // 8) * 8         # sublane multiple, 1 grid step
        tb = rows_p
    else:
        tb = block_rows                        # multiple of 8
        rows_p = -(-rows // tb) * tb           # no partial last block
    b_pad = rows_p * k
    time_pad = jnp.zeros((b_pad,), jnp.float32).at[:b].set(time_f)
    time2d = time_pad.reshape(rows_p, k)

    grid = (rows_p // tb,)
    kernel = functools.partial(_sinusoidal_kernel, dim_p=dim_p, k=k)

    out2d = pl.pallas_call(
        kernel,
        out_shape=jax.ShapeDtypeStruct((rows_p, width), jnp.float32),
        grid=grid,
        in_specs=[
            pl.BlockSpec((tb, k), lambda i: (i, 0)),        # packed timesteps
            pl.BlockSpec((1, width), lambda i: (0, 0)),     # freq row (const)
            pl.BlockSpec((1, width), lambda i: (0, 0)),     # phase row (const)
        ],
        out_specs=pl.BlockSpec((tb, width), lambda i: (i, 0)),
        compiler_params=pltpu.CompilerParams(
            dimension_semantics=("parallel",)
        ),
    )(time2d, freq_row, phase_row)

    # ---- undo padding / packing (row-major, cheap) ---------------------------
    if dim_p == dim:
        out = out2d.reshape(rows_p * k, dim)[:b]
    else:  # k == 1 here: drop the padded lanes, then the padded rows
        out = out2d[:, :dim][:b]
    return out


def _reference(time: jax.Array, dim: int) -> jax.Array:
    """Pure-JAX port of the PyTorch module (the spec)."""
    t = time.astype(jnp.float32)[:, None]
    half = dim // 2
    exponent = jnp.arange(half, dtype=jnp.float32) / half
    freq = jnp.float32(1e-4) ** exponent
    thetas = t * freq
    return jnp.concatenate([jnp.sin(thetas), jnp.cos(thetas)], axis=-1)


if __name__ == "__main__":
    key = jax.random.PRNGKey(0)

    # Case 1: dim < 128 -> packed path (k = 2).
    batch, dim = 8, 64
    t1 = jax.random.randint(key, (batch,), 0, 1000).astype(jnp.float32)
    out1 = jax.block_until_ready(sinusoidal_position_embeddings(t1, dim))
    ref1 = _reference(t1, dim)
    assert out1.shape == (batch, dim) and out1.dtype == jnp.float32
    assert jnp.allclose(out1, ref1, atol=2e-3, rtol=2e-3), "mismatch (dim=64)"

    # Case 2: batch not a multiple of k -> wrapper padding path (same kernel).
    t2 = t1[:5]
    out2 = jax.block_until_ready(sinusoidal_position_embeddings(t2, dim))
    ref2 = _reference(t2, dim)
    assert out2.shape == (5, dim)
    assert jnp.allclose(out2, ref2, atol=2e-3, rtol=2e-3), "mismatch (b=5)"

    # Case 3: dim == 128 -> unpacked path (k = 1), no mask arithmetic at all.
    batch3, dim3 = 16, 128
    t3 = jax.random.randint(jax.random.PRNGKey(0), (batch3,), 0, 1000).astype(
        jnp.float32
    )
    out3 = jax.block_until_ready(sinusoidal_position_embeddings(t3, dim3))
    ref3 = _reference(t3, dim3)
    assert out3.shape == (batch3, dim3)
    assert jnp.allclose(out3, ref3, atol=2e-3, rtol=2e-3), "mismatch (dim=128)"

    # Case 4: dim >= 128, not a multiple of 128 -> lane-padded path.
    batch4, dim4 = 4, 160
    t4 = jax.random.randint(jax.random.PRNGKey(0), (batch4,), 0, 1000).astype(
        jnp.float32
    )
    out4 = jax.block_until_ready(sinusoidal_position_embeddings(t4, dim4))
    ref4 = _reference(t4, dim4)
    assert out4.shape == (batch4, dim4)
    assert jnp.allclose(out4, ref4, atol=2e-3, rtol=2e-3), "mismatch (dim=160)"

    print("KERNEL_OK")
</pallas_src>

<mosaic_0001>
module attributes {stable_mosaic.version = 11 : i64} {
  func.func @_sinusoidal_kernel(%arg0: i32, %arg1: memref<8x2xf32, #tpu.memory_space<vmem>>, %arg2: memref<1x128xf32, #tpu.memory_space<vmem>>, %arg3: memref<1x128xf32, #tpu.memory_space<vmem>>, %arg4: memref<8x128xf32, #tpu.memory_space<vmem>>) attributes {dimension_semantics = [#tpu.dimension_semantics<parallel>], iteration_bounds = array<i64: 1>, scalar_prefetch = 0 : i64, scratch_operands = 0 : i64, tpu.core_type = #tpu.core_type<tc>, window_params = [{transform_indices = @transform_0, window_bounds = array<i64: 8, 2>}, {pipeline_mode = #tpu.pipeline_mode<synchronous>, transform_indices = @transform_1, window_bounds = array<i64: 1, 128>}, {pipeline_mode = #tpu.pipeline_mode<synchronous>, transform_indices = @transform_2, window_bounds = array<i64: 1, 128>}, {transform_indices = @transform_3, window_bounds = array<i64: 8, 128>}]} {
    %c0 = arith.constant 0 : index
    %c0_0 = arith.constant 0 : index
    %0 = vector.load %arg1[%c0, %c0_0] : memref<8x2xf32, #tpu.memory_space<vmem>>, vector<8x2xf32>
    %c0_1 = arith.constant 0 : index
    %c0_2 = arith.constant 0 : index
    %1 = vector.load %arg2[%c0_1, %c0_2] : memref<1x128xf32, #tpu.memory_space<vmem>>, vector<1x128xf32>
    %c0_3 = arith.constant 0 : index
    %c0_4 = arith.constant 0 : index
    %2 = vector.load %arg3[%c0_3, %c0_4] : memref<1x128xf32, #tpu.memory_space<vmem>>, vector<1x128xf32>
    %3 = tpu.iota {dimensions = array<i32: 1>} : vector<8x128xi32>
    %4 = vector.extract_strided_slice %0 {offsets = [0, 0], sizes = [8, 1], strides = [1, 1]} : vector<8x2xf32> to vector<8x1xf32>
    %5 = vector.shape_cast %4 : vector<8x1xf32> to vector<8x1xf32>
    %6 = vector.broadcast %5 : vector<8x1xf32> to vector<8x128xf32>
    %c64_i32 = arith.constant 64 : i32
    %7 = vector.broadcast %c64_i32 : i32 to vector<8x128xi32>
    %8 = arith.cmpi sge, %3, %7 : vector<8x128xi32>
    %9 = vector.extract_strided_slice %0 {offsets = [0, 1], sizes = [8, 1], strides = [1, 1]} : vector<8x2xf32> to vector<8x1xf32>
    %10 = vector.shape_cast %9 : vector<8x1xf32> to vector<8x1xf32>
    %11 = vector.broadcast %10 : vector<8x1xf32> to vector<8x128xf32>
    %12 = arith.select %8, %11, %6 : vector<8x128xi1>, vector<8x128xf32>
    %13 = vector.broadcast %1 : vector<1x128xf32> to vector<8x128xf32>
    %14 = arith.mulf %12, %13 : vector<8x128xf32>
    %15 = vector.broadcast %2 : vector<1x128xf32> to vector<8x128xf32>
    %16 = arith.addf %14, %15 : vector<8x128xf32>
    %17 = math.sin %16 : vector<8x128xf32>
    %c0_5 = arith.constant 0 : index
    %c0_6 = arith.constant 0 : index
    %18 = vector.load %arg4[%c0_5, %c0_6] : memref<8x128xf32, #tpu.memory_space<vmem>>, vector<8x128xf32>
    tpu.vector_store %arg4[%c0_5, %c0_6], %17 {strides = array<i32>} : memref<8x128xf32, #tpu.memory_space<vmem>>, vector<8x128xf32>,
    return
  }
  func.func @transform_0(%arg0: i32) -> (i32, i32) {
    %c0_i32 = arith.constant 0 : i32
    %c0_i32_0 = arith.constant 0 : i32
    return %arg0, %c0_i32 : i32, i32
  }
  func.func @transform_1(%arg0: i32) -> (i32, i32) {
    %c0_i32 = arith.constant 0 : i32
    %c0_i32_0 = arith.constant 0 : i32
    %c0_i32_1 = arith.constant 0 : i32
    return %c0_i32, %c0_i32_0 : i32, i32
  }
  func.func @transform_2(%arg0: i32) -> (i32, i32) {
    %c0_i32 = arith.constant 0 : i32
    %c0_i32_0 = arith.constant 0 : i32
    %c0_i32_1 = arith.constant 0 : i32
    return %c0_i32, %c0_i32_0 : i32, i32
  }
  func.func @transform_3(%arg0: i32) -> (i32, i32) {
    %c0_i32 = arith.constant 0 : i32
    %c0_i32_0 = arith.constant 0 : i32
    return %arg0, %c0_i32 : i32, i32
  }
}

</mosaic_0001>

<bundles_post_ra>
// kernel: tpu_custom_call.1
= control target key start
LH: loop header
LB: loop body
LE: loop exit
PB: predicated region body
PF: predicated region fallthrough
CT: control target
= control target key end

     0   :  { %s284_s0 = inlined_call_operand.vmem [shape: f32[8,2], index: 0, kind: input, shape index: {}]   ;;  %s285_s1 = inlined_call_operand.vmem [shape: f32[1,128], index: 1, kind: input, shape index: {}]   ;;  %s286_s2 = inlined_call_operand.vmem [shape: f32[1,128], index: 2, kind: input, shape index: {}]   ;;  %s287_s3 = inlined_call_operand.hbm [shape: f32[8,128], index: 3, kind: output, shape index: {}]  }
   0x1   :  { %v15_v0 = vld [vmem:[%s284_s0] sm:$0xff] }
   0x2   :  { %8 = vsyncpa [#allocation3], 0  ;;  %v213_v1 = vmov 0   ;;  %v214_v2 = vmov 1   ;;  %v18_v3 = vlaneseq  ;;  %v164_v6 = vld [vmem:[%s285_s1] ss:$0 sm:$0xff] }
   0x3   :  { %183 = vset.pattern.permute.xlu0 %v213_v1  ;;  %v165_v8 = vld [vmem:[%s286_s2] ss:$0 sm:$0xff]  ;;  %v215_v22 = vmov 683565275   ;;  %v216_v24 = vmov 2475754826  }
   0x4   :  { %22 = vperm.xlu0 %183, %v15_v0   ;;  %v19_v4 = vand.u32 127, %v18_v3  ;;  %v217_v27 = vmov 2131351028   ;;  %v218_v30 = vmov 2102212464   ;;  %s221_s0 = smov [#allocation2]  }
   0x5   :  { %v219_v33 = vmov 920167782   ;;  %v220_v36 = vmov 1326507024   ;;  %s156_s1 = sshll.u32 %s221_s0, 4  ;;  %s157_s1 = int_to_ptr.vmem [resolvable:$true] %s156_s1 }
   0x6   :  { %vm25_vm0 = vcmp.ge.s32.totalorder %v19_v4, 64  ;;  %s189_s2 = scalar_lea.vmem %s157_s1, 128  ;;  %p194_p1 = scmp.lt.s32.totalorder %s157_s1, %s157_s1 }
   0x7   :  { %p190_p0 = scmp.ne.s32.totalorder %s157_s1, %s189_s2  ;;  %p195_p2 = scmp.lt.s32.totalorder %s189_s2, %s189_s2 }
   0x8   :  { %184 = vset.pattern.permute.xlu0 %v214_v2 }
   0x9   :  { %27 = vperm.xlu0 %184, %v15_v0   ;;  %p196_p3 = por %p195_p2, %p194_p1 }
   0xb   :  { %p197_p4 = pnand %p196_p3, %p190_p0 }
  0x83   :  { %v23_v5 = vpop.permute.xlu0 %22 }
  0x88   :  { %v28_v7 = vpop.permute.xlu0 %27 }
  0x89   :  { %v30_v9 = vsel %vm25_vm0, %v28_v7, %v23_v5 }
  0x8a   :  { %v37_v10 = vmul.f32 %v164_v6, %v30_v9 }
  0x8c   :  { %v251_v11 = vadd.f32 %v165_v8, %v37_v10 }
  0x8e   :  { %v48_v12 = vand.u32 2139095040, %v251_v11  ;;  %v45_v16 = vand.u32 2147483647, %v251_v11  ;;  %vm47_vm8 = vcmp.lt.s32.totalorder %v251_v11, 0  ;;  %vm137_vm13 = vweird.f32 %v251_v11 }
  0x90   :  { %v49_v13 = vshrl.u32 %v48_v12, 23  ;;  %v52_v20 = vand.u32 8388607, %v45_v16  ;;  %vm46_vm9 = vcmp.le.f32.partialorder %v45_v16, 0.7853982 }
  0x92   :  { %v166_v14 = vadd.s32 4294967169, %v49_v13  ;;  %v53_v38 = vor.u32 8388608, %v52_v20 }
  0x94   :  { %v55_v15 = vadd.s32 1, %v166_v14  ;;  %v93_v52 = vshll.u32 %v53_v38, 8 }
  0x96   :  { %vm56_vm1 = vcmp.gt.s32.totalorder %v55_v15, 0 }
  0x97   :  { %v57_v17 = vsel %vm56_vm1, %v55_v15, 0 }
  0x98   :  { %v59_v18 = vand.u32 31, %v57_v17  ;;  %v58_v21 = vshrl.u32 %v57_v17, 5 }
  0x9a   :  { %v60_v19 = vsub.s32 32, %v59_v18  ;;  %v62_v23 = vshll.u32 %v215_v22, %v59_v18  ;;  %v65_v25 = vshll.u32 %v216_v24, %v59_v18  ;;  %v68_v29 = vshll.u32 %v217_v27, %v59_v18 }
  0x9b   :  { %v71_v32 = vshll.u32 %v218_v30, %v59_v18  ;;  %v74_v35 = vshll.u32 %v219_v33, %v59_v18  ;;  %vm77_vm2 = vcmp.lt.s32.totalorder %v58_v21, 1  ;;  %vm80_vm3 = vcmp.lt.s32.totalorder %v58_v21, 4 }
  0x9c   :  { %v63_v26 = vshrl.u32 %v216_v24, %v60_v19  ;;  %v66_v28 = vshrl.u32 %v217_v27, %v60_v19  ;;  %v69_v31 = vshrl.u32 %v218_v30, %v60_v19  ;;  %v72_v34 = vshrl.u32 %v219_v33, %v60_v19 }
  0x9d   :  { %v75_v37 = vshrl.u32 %v220_v36, %v60_v19  ;;  %v61_v47 = vshrl.u32 %v215_v22, %v60_v19  ;;  %vm79_vm4 = vcmp.lt.s32.totalorder %v58_v21, 3  ;;  %vm78_vm5 = vcmp.lt.s32.totalorder %v58_v21, 2 }
  0x9e   :  { %v64_v39 = vor.u32 %v63_v26, %v62_v23  ;;  %v67_v40 = vor.u32 %v66_v28, %v65_v25  ;;  %v70_v41 = vor.u32 %v69_v31, %v68_v29  ;;  %v73_v42 = vor.u32 %v72_v34, %v71_v32 }
  0x9f   :  { %v76_v43 = vor.u32 %v75_v37, %v74_v35 }
  0xa0   :  { %v82_v44 = vsel %vm80_vm3, %v70_v41, 2102212464  ;;  %v85_v45 = vsel %vm77_vm2, %v64_v39, %v67_v40  ;;  %v89_v46 = vsel %vm77_vm2, %v67_v40, %v70_v41  ;;  %v86_v48 = vsel %vm80_vm3, %v73_v42, 920167782 }
  0xa1   :  { %v90_v49 = vsel %vm80_vm3, %v76_v43, 1326507024  ;;  %v87_v50 = vsel %vm79_vm4, %v70_v41, %v86_v48  ;;  %v81_v53 = vsel %vm77_vm2, %v61_v47, %v64_v39  ;;  %v83_v54 = vsel %vm79_vm4, %v67_v40, %v82_v44 }
  0xa2   :  { %v91_v51 = vsel %vm79_vm4, %v73_v42, %v90_v49  ;;  %v88_v55 = vsel %vm78_vm5, %v85_v45, %v87_v50  ;;  %v84_v61 = vsel %vm78_vm5, %v81_v53, %v83_v54 }
  0xa3   :  { %v92_v56 = vsel %vm78_vm5, %v89_v46, %v91_v51  ;;  %v260_v59 = vmul.u32.u64.low %v93_v52, %v88_v55  ;;  %v261_v60 = vmul.u32.u64.high %v93_v52, %v88_v55, %v260_v59  ;;  %v100_v63 = vmul.u32 %v93_v52, %v84_v61 }
  0xa4   :  { %v257_v57 = vmul.u32.u64.low %v93_v52, %v92_v56  ;;  %v258_v58 = vmul.u32.u64.high %v93_v52, %v92_v56, %v257_v57 }
  0xa5   :  { %v103_v62 = vadd.s32 1, %v261_v60 }
  0xa6   :  { %vm102_vm6 = vc.u32 %v258_v58, %v260_v59  ;;  %v101_v12 = vadd.s32 %v260_v59, %v258_v58 }
  0xa7   :  { %v104_v0 = vsel %vm102_vm6, %v103_v62, %v261_v60 }
  0xa8   :  { %v105_v1 = vadd.s32 %v104_v0, %v100_v63 }
  0xaa   :  { %v106_v2 = vadd.s32 536870912, %v105_v1 }
  0xac   :  { %v107_v3 = vshrl.u32 %v106_v2, 30 }
  0xae   :  { %v108_v4 = vshll.u32 %v107_v3, 30  ;;  %v131_v25 = vsub.s32 4, %v107_v3 }
  0xb0   :  { %v109_v5 = vsub.s32 %v105_v1, %v108_v4  ;;  %v132_v28 = vsel %vm47_vm8, %v131_v25, %v107_v3 }
  0xb1   :  { %v134_v30 = vsel %vm46_vm9, 0, %v132_v28 }
  0xb2   :  { %v111_v6 = vsub.s32 0, %v109_v5  ;;  %v138_v31 = vadd.s32 3, %v134_v30 }
  0xb4   :  { %v167_v7 = vmin.u32 %v111_v6, %v109_v5  ;;  %v139_v32 = vand.u32 3, %v138_v31 }
  0xb6   :  { %v113_v8 = vclz %v167_v7  ;;  %vm144_vm10 = vcmp.eq.s32.totalorder %v139_v32, 2  ;;  %vm141_vm11 = vcmp.eq.s32.totalorder %v139_v32, 0  ;;  %vm140_vm12 = vcmp.lt.s32.totalorder %v139_v32, 2 }
  0xb8   :  { %v168_v9 = vadd.s32 4294967294, %v113_v8 }
  0xba   :  { %vm169_vm7 = vcmp.lt.s32.totalorder %v168_v9, 0 }
  0xbb   :  { %v116_v10 = vsel %vm169_vm7, 0, %v168_v9 }
  0xbc   :  { %v117_v13 = vsub.s32 32, %v116_v10  ;;  %v121_v14 = vsub.s32 4294967266, %v116_v10  ;;  %v118_v15 = vshll.u32 %v109_v5, %v116_v10 }
  0xbe   :  { %v119_v17 = vshrl.u32 %v101_v12, %v117_v13  ;;  %v122_v18 = vadd.s32 127, %v121_v14 }
  0xc0   :  { %v120_v19 = vor.u32 %v119_v17, %v118_v15  ;;  %v123_v20 = vshll.u32 %v122_v18, 23 }
  0xc2   :  { %v124_v21 = vor.u32 4788187, %v123_v20  ;;  %v127_v23 = vcvt.s32.f32 %v120_v19 }
  0xc4   :  { %v125_v22 = vand.u32 2147483647, %v124_v21 }
  0xc6   :  { %v128_v24 = vmul.f32 %v127_v23, %v125_v22 }
  0xc8   :  { %v129_v26 = vxor.u32 2147483648, %v128_v24 }
  0xca   :  { %v130_v27 = vsel %vm47_vm8, %v129_v26, %v128_v24 }
  0xcb   :  { %v133_v29 = vsel %vm46_vm9, %v251_v11, %v130_v27 }
  0xcc   :  { %185 = vcosq.f32 %v133_v29 }
  0xcd   :  { %187 = vsinq.f32 %v133_v29 }
  0xd6   :  { %v186_v33 = vpop.eup %185 }
  0xd7   :  { %v188_v34 = vpop.eup %187  ;;  %v145_v35 = vxor.u32 2147483648, %v186_v33 }
  0xd8   :  { %v142_v36 = vxor.u32 2147483648, %v188_v34 }
  0xd9   :  { %v146_v37 = vsel %vm144_vm10, %v145_v35, %v188_v34 }
  0xda   :  { %v143_v16 = vsel %vm141_vm11, %v186_v33, %v142_v36 }
  0xdb   :  { %v147_v38 = vsel %vm140_vm12, %v143_v16, %v146_v37 }
  0xdc   :  { %v148_v39 = vsel %vm137_vm13, nan, %v147_v38 }
  0xdd   :  { %149 = vst [vmem:[#allocation2] sm:$0xff] %v148_v39 }
  0xde   :  { %200 = shalt.err (!%p197_p4)
}
  0xdf   :  { %s201_s20 = scalar_lea.hbm %s287_s3, 128 }
  0xe0   :  { %p202_p5 = scmp.ne.s32.totalorder %s287_s3, %s201_s20  ;;  %p205_p6 = scmp.lt.u32.totalorder %s201_s20, %s287_s3 }
  0xe2   :  { %p207_p7 = pnand %p205_p6, %p202_p5 }
  0xe4   :  { %210 = shalt.err (!%p207_p7)
}
  0xe5   :  { %159 = dma.vmem_to_hbm [thread:$0]  %s157_s1, 128, %s287_s3, [#allocation3]  }
  0xe6   :  { %211 = dma.done.wait [#allocation3], 128  }
  0xe7   :  { %212 = vsyncadd [#allocation3], 4294967168 }
  0xe8   :  { %163 = vsyncpa [#allocation3], 1 }

</bundles_post_ra>
